<compile_context>
chip_gen: v5e
topology: v5e:2x2
jax: 0.10.0
libtpu: 0.0.40
codegen_flags: <defaults>
</compile_context>

<pallas_src>
import math

import jax
import jax.numpy as jnp
from jax import lax
from jax.experimental import pallas as pl
from jax.experimental.pallas import tpu as pltpu

NEG_SLOPE = 0.2  # LeakyReLU negative slope


# ---------------------------------------------------------------------------
# Pallas kernel: one Downsampling stage
#   (replication-padded, space-to-depth input) -> conv3x3 stride2 + bias + LeakyReLU
# ---------------------------------------------------------------------------
def _conv_stage_kernel(s_ref, w_ref, b_ref, o_ref):
    # s_ref : (TB, OH+1, OW+1, 4*Cin)  space-to-depth of the replicate-padded input
    # w_ref : (4, 4*Cin, Cout)         weights of the equivalent stride-1 2x2 conv
    # b_ref : (1, Cout)
    # o_ref : (TB, OH, OW, Cout)
    tb, oh, ow, c_out = o_ref.shape
    c4 = s_ref.shape[-1]
    m = tb * oh * ow

    acc = jnp.zeros((m, c_out), jnp.float32)
    for sy in range(2):                       # static unroll: 4 tap matmuls, K = 4*Cin
        for sx in range(2):
            tap = s_ref[:, pl.ds(sy, oh), pl.ds(sx, ow), :]        # (TB, OH, OW, 4*Cin)
            tap2d = tap.reshape(m, c4).astype(jnp.float32)
            acc = acc + jnp.dot(tap2d,
                                w_ref[2 * sy + sx].astype(jnp.float32),
                                preferred_element_type=jnp.float32)

    y = acc + b_ref[...].astype(jnp.float32)
    y = jnp.where(y >= 0, y, NEG_SLOPE * y)                        # LeakyReLU(0.2)
    o_ref[...] = y.reshape(tb, oh, ow, c_out).astype(o_ref.dtype)


# ---------------------------------------------------------------------------
# Weight transform: (Cout, Cin, 3, 3) -> (4 shifts, 4*Cin, Cout)
# Matches the space-to-depth channel order (py, px, cin); dy = 2*sy + py,
# dx = 2*sx + px, with zero weight for the out-of-range dy==3 / dx==3 combos.
# ---------------------------------------------------------------------------
def _conv_weight_to_s2d(w):
    c_out, c_in = w.shape[0], w.shape[1]
    wz = jnp.concatenate([w, jnp.zeros((c_out, c_in, 1, 3), w.dtype)], axis=2)   # dy -> 4
    wz = jnp.concatenate([wz, jnp.zeros((c_out, c_in, 4, 1), wz.dtype)], axis=3) # dx -> 4
    wz = wz.reshape(c_out, c_in, 2, 2, 2, 2)          # (cout, cin, sy, py, sx, px)
    wz = wz.transpose(2, 4, 3, 5, 1, 0)               # (sy, sx, py, px, cin, cout)
    return wz.reshape(4, 4 * c_in, c_out)


def _pick_batch_tile(batch, per_item_bytes, budget_bytes=12 << 20):
    """Largest divisor of `batch` fitting the VMEM budget; keep >= 2 grid steps
    when batch >= 2 so both v7x TensorCores get work."""
    best = 1
    for t in range(1, batch + 1):
        if batch % t != 0:
            continue
        if t * per_item_bytes > budget_bytes:
            continue
        if batch >= 2 and batch // t < 2:
            continue
        best = t
    return best


# ---------------------------------------------------------------------------
# One stage: pad(replicate) + space-to-depth in the wrapper, conv in Pallas
# ---------------------------------------------------------------------------
def _conv_stage(x_nhwc, w, b):
    B, H, W, c_in = x_nhwc.shape
    # TODO(synk): odd spatial sizes (module supports them via floor-div output)
    # are not handled by the even space-to-depth split; all stages here are even.
    assert H % 2 == 0 and W % 2 == 0, "kernel assumes even spatial dims per stage"
    OH, OW = H // 2, W // 2
    c_out = w.shape[0]

    # Replication pad + space-to-depth (exact layout prep, no compute).
    xp = jnp.pad(x_nhwc, ((0, 0), (1, 1), (1, 1), (0, 0)), mode="edge")
    s2d = xp.reshape(B, OH + 1, 2, OW + 1, 2, c_in)
    s2d = s2d.transpose(0, 1, 3, 2, 4, 5).reshape(B, OH + 1, OW + 1, 4 * c_in)

    w_s2d = _conv_weight_to_s2d(w)                     # (4, 4*Cin, Cout)
    b2 = b.reshape(1, c_out)

    itemsize = jnp.dtype(x_nhwc.dtype).itemsize
    per_item = ((OH + 1) * (OW + 1) * 4 * c_in + OH * OW * c_out) * itemsize
    TB = _pick_batch_tile(B, per_item)

    return pl.pallas_call(
        _conv_stage_kernel,
        out_shape=jax.ShapeDtypeStruct((B, OH, OW, c_out), x_nhwc.dtype),
        grid_spec=pltpu.PrefetchScalarGridSpec(
            num_scalar_prefetch=0,
            grid=(B // TB,),
            in_specs=[
                pl.BlockSpec((TB, OH + 1, OW + 1, 4 * c_in), lambda i: (i, 0, 0, 0)),
                pl.BlockSpec((4, 4 * c_in, c_out), lambda i: (0, 0, 0)),
                pl.BlockSpec((1, c_out), lambda i: (0, 0)),
            ],
            out_specs=pl.BlockSpec((TB, OH, OW, c_out), lambda i: (i, 0, 0, 0)),
        ),
        compiler_params=pltpu.CompilerParams(
            dimension_semantics=("parallel",)),
    )(s2d, w_s2d, b2)


def downsampling_forward(x_nchw, params):
    """Downsampling forward.  x: NCHW; params: list of (w (Cout,Cin,3,3), b (Cout,))."""
    x = jnp.transpose(x_nchw, (0, 2, 3, 1))            # NCHW -> NHWC once
    for w, b in params:
        x = _conv_stage(x, w, b)
    return jnp.transpose(x, (0, 3, 1, 2))              # back to NCHW


# ---------------------------------------------------------------------------
# deterministic parameter init (basic_module_init style: kaiming-ish, zero bias)
# ---------------------------------------------------------------------------
def init_params(key, in_channels, dims):
    params = []
    in_ch = in_channels
    for dim in dims:
        key, k = jax.random.split(key)
        fan_in = in_ch * 9
        w = jax.random.normal(k, (dim, in_ch, 3, 3), jnp.float32) * math.sqrt(2.0 / fan_in)
        b = jnp.zeros((dim,), jnp.float32)
        params.append((w, b))
        in_ch = dim
    return params


# ---------------------------------------------------------------------------
# pure-JAX/XLA reference (matches the PyTorch module semantics)
# ---------------------------------------------------------------------------
def reference_forward(x_nchw, params):
    with jax.default_matmul_precision("highest"):
        x = x_nchw
        for w, b in params:
            xp = jnp.pad(x, ((0, 0), (0, 0), (1, 1), (1, 1)), mode="edge")  # ReplicationPad2d
            y = lax.conv_general_dilated(
                xp, w, window_strides=(2, 2), padding="VALID",
                dimension_numbers=("NCHW", "OIHW", "NCHW"))
            y = y + b[None, :, None, None]
            x = jnp.where(y >= 0, y, NEG_SLOPE * y)
        return x


if __name__ == "__main__":
    key = jax.random.PRNGKey(0)
    kx, kp = jax.random.split(key)

    IN_CHANNELS = 4
    DIMS = (32, 64)                 # Downsampling(in_channels=4, dims=(32, 64))
    x = jax.random.normal(kx, (2, IN_CHANNELS, 16, 16), jnp.float32)
    params = init_params(kp, IN_CHANNELS, DIMS)

    fwd = jax.jit(downsampling_forward)
    out = jax.block_until_ready(fwd(x, params))

    ref = reference_forward(x, params)
    assert out.shape == (2, DIMS[-1], 4, 4), out.shape
    err = float(jnp.max(jnp.abs(out - ref)))
    assert err < 2e-2, f"max abs err {err}"
    print("KERNEL_OK")
</pallas_src>

<mosaic_0001>
module attributes {stable_mosaic.version = 11 : i64} {
  func.func @_conv_stage_kernel(%arg0: i32, %arg1: memref<1x9x9x16xf32, #tpu.memory_space<vmem>>, %arg2: memref<4x16x32xf32, #tpu.memory_space<vmem>>, %arg3: memref<1x32xf32, #tpu.memory_space<vmem>>, %arg4: memref<1x8x8x32xf32, #tpu.memory_space<vmem>>) attributes {dimension_semantics = [#tpu.dimension_semantics<parallel>], iteration_bounds = array<i64: 2>, scalar_prefetch = 0 : i64, scratch_operands = 0 : i64, tpu.core_type = #tpu.core_type<tc>, window_params = [{transform_indices = @transform_0, window_bounds = array<i64: 1, 9, 9, 16>}, {pipeline_mode = #tpu.pipeline_mode<synchronous>, transform_indices = @transform_1, window_bounds = array<i64: 4, 16, 32>}, {pipeline_mode = #tpu.pipeline_mode<synchronous>, transform_indices = @transform_2, window_bounds = array<i64: 1, 32>}, {transform_indices = @transform_3, window_bounds = array<i64: 1, 8, 8, 32>}]} {
    %cst = arith.constant 0.000000e+00 : f32
    %0 = vector.broadcast %cst : f32 to vector<64x32xf32>
    %c0 = arith.constant 0 : index
    %c0_0 = arith.constant 0 : index
    %c0_1 = arith.constant 0 : index
    %c0_2 = arith.constant 0 : index
    %1 = vector.load %arg1[%c0, %c0_0, %c0_1, %c0_2] : memref<1x9x9x16xf32, #tpu.memory_space<vmem>>, vector<1x8x8x16xf32>
    %2 = vector.shape_cast %1 : vector<1x8x8x16xf32> to vector<64x16xf32>
    %c0_3 = arith.constant 0 : index
    %c0_4 = arith.constant 0 : index
    %c0_5 = arith.constant 0 : index
    %3 = vector.load %arg2[%c0_3, %c0_4, %c0_5] : memref<4x16x32xf32, #tpu.memory_space<vmem>>, vector<1x16x32xf32>
    %4 = vector.shape_cast %3 : vector<1x16x32xf32> to vector<16x32xf32>
    %cst_6 = arith.constant dense<0.000000e+00> : vector<64x32xf32>
    %5 = tpu.matmul %2, %4, %cst_6 {dimension_numbers = #tpu.dot_dimension_numbers<[1], [0], [0], [1], [0, 0, 1, 1], [], []>} : vector<64x16xf32>, vector<16x32xf32>, vector<64x32xf32> -> vector<64x32xf32>
    %6 = arith.addf %0, %5 : vector<64x32xf32>
    %c0_7 = arith.constant 0 : index
    %c0_8 = arith.constant 0 : index
    %c1 = arith.constant 1 : index
    %c0_9 = arith.constant 0 : index
    %7 = vector.load %arg1[%c0_7, %c0_8, %c1, %c0_9] : memref<1x9x9x16xf32, #tpu.memory_space<vmem>>, vector<1x8x8x16xf32>
    %8 = vector.shape_cast %7 : vector<1x8x8x16xf32> to vector<64x16xf32>
    %c1_10 = arith.constant 1 : index
    %c0_11 = arith.constant 0 : index
    %c0_12 = arith.constant 0 : index
    %9 = vector.load %arg2[%c1_10, %c0_11, %c0_12] : memref<4x16x32xf32, #tpu.memory_space<vmem>>, vector<1x16x32xf32>
    %10 = vector.shape_cast %9 : vector<1x16x32xf32> to vector<16x32xf32>
    %cst_13 = arith.constant dense<0.000000e+00> : vector<64x32xf32>
    %11 = tpu.matmul %8, %10, %cst_13 {dimension_numbers = #tpu.dot_dimension_numbers<[1], [0], [0], [1], [0, 0, 1, 1], [], []>} : vector<64x16xf32>, vector<16x32xf32>, vector<64x32xf32> -> vector<64x32xf32>
    %12 = arith.addf %6, %11 : vector<64x32xf32>
    %c0_14 = arith.constant 0 : index
    %c1_15 = arith.constant 1 : index
    %c0_16 = arith.constant 0 : index
    %c0_17 = arith.constant 0 : index
    %13 = vector.load %arg1[%c0_14, %c1_15, %c0_16, %c0_17] : memref<1x9x9x16xf32, #tpu.memory_space<vmem>>, vector<1x8x8x16xf32>
    %14 = vector.shape_cast %13 : vector<1x8x8x16xf32> to vector<64x16xf32>
    %c2 = arith.constant 2 : index
    %c0_18 = arith.constant 0 : index
    %c0_19 = arith.constant 0 : index
    %15 = vector.load %arg2[%c2, %c0_18, %c0_19] : memref<4x16x32xf32, #tpu.memory_space<vmem>>, vector<1x16x32xf32>
    %16 = vector.shape_cast %15 : vector<1x16x32xf32> to vector<16x32xf32>
    %cst_20 = arith.constant dense<0.000000e+00> : vector<64x32xf32>
    %17 = tpu.matmul %14, %16, %cst_20 {dimension_numbers = #tpu.dot_dimension_numbers<[1], [0], [0], [1], [0, 0, 1, 1], [], []>} : vector<64x16xf32>, vector<16x32xf32>, vector<64x32xf32> -> vector<64x32xf32>
    %18 = arith.addf %12, %17 : vector<64x32xf32>
    %c0_21 = arith.constant 0 : index
    %c1_22 = arith.constant 1 : index
    %c1_23 = arith.constant 1 : index
    %c0_24 = arith.constant 0 : index
    %19 = vector.load %arg1[%c0_21, %c1_22, %c1_23, %c0_24] : memref<1x9x9x16xf32, #tpu.memory_space<vmem>>, vector<1x8x8x16xf32>
    %20 = vector.shape_cast %19 : vector<1x8x8x16xf32> to vector<64x16xf32>
    %c3 = arith.constant 3 : index
    %c0_25 = arith.constant 0 : index
    %c0_26 = arith.constant 0 : index
    %21 = vector.load %arg2[%c3, %c0_25, %c0_26] : memref<4x16x32xf32, #tpu.memory_space<vmem>>, vector<1x16x32xf32>
    %22 = vector.shape_cast %21 : vector<1x16x32xf32> to vector<16x32xf32>
    %cst_27 = arith.constant dense<0.000000e+00> : vector<64x32xf32>
    %23 = tpu.matmul %20, %22, %cst_27 {dimension_numbers = #tpu.dot_dimension_numbers<[1], [0], [0], [1], [0, 0, 1, 1], [], []>} : vector<64x16xf32>, vector<16x32xf32>, vector<64x32xf32> -> vector<64x32xf32>
    %24 = arith.addf %18, %23 : vector<64x32xf32>
    %c0_28 = arith.constant 0 : index
    %c0_29 = arith.constant 0 : index
    %25 = vector.load %arg3[%c0_28, %c0_29] : memref<1x32xf32, #tpu.memory_space<vmem>>, vector<1x32xf32>
    %26 = vector.broadcast %25 : vector<1x32xf32> to vector<64x32xf32>
    %27 = arith.addf %24, %26 : vector<64x32xf32>
    %cst_30 = arith.constant 0.000000e+00 : f32
    %28 = vector.broadcast %cst_30 : f32 to vector<64x32xf32>
    %29 = arith.cmpf oge, %27, %28 : vector<64x32xf32>
    %cst_31 = arith.constant 2.000000e-01 : f32
    %30 = vector.broadcast %cst_31 : f32 to vector<64x32xf32>
    %31 = arith.mulf %30, %27 : vector<64x32xf32>
    %32 = arith.select %29, %27, %31 : vector<64x32xi1>, vector<64x32xf32>
    %33 = vector.shape_cast %32 : vector<64x32xf32> to vector<1x8x8x32xf32>
    %c0_32 = arith.constant 0 : index
    %c0_33 = arith.constant 0 : index
    %c0_34 = arith.constant 0 : index
    %c0_35 = arith.constant 0 : index
    %34 = vector.load %arg4[%c0_32, %c0_33, %c0_34, %c0_35] : memref<1x8x8x32xf32, #tpu.memory_space<vmem>>, vector<1x8x8x32xf32>
    tpu.vector_store %arg4[%c0_32, %c0_33, %c0_34, %c0_35], %33 {strides = array<i32>} : memref<1x8x8x32xf32, #tpu.memory_space<vmem>>, vector<1x8x8x32xf32>,
    return
  }
  func.func @transform_0(%arg0: i32) -> (i32, i32, i32, i32) {
    %c0_i32 = arith.constant 0 : i32
    %c0_i32_0 = arith.constant 0 : i32
    %c0_i32_1 = arith.constant 0 : i32
    %c0_i32_2 = arith.constant 0 : i32
    return %arg0, %c0_i32, %c0_i32_0, %c0_i32_1 : i32, i32, i32, i32
  }
  func.func @transform_1(%arg0: i32) -> (i32, i32, i32) {
    %c0_i32 = arith.constant 0 : i32
    %c0_i32_0 = arith.constant 0 : i32
    %c0_i32_1 = arith.constant 0 : i32
    %c0_i32_2 = arith.constant 0 : i32
    return %c0_i32, %c0_i32_0, %c0_i32_1 : i32, i32, i32
  }
  func.func @transform_2(%arg0: i32) -> (i32, i32) {
    %c0_i32 = arith.constant 0 : i32
    %c0_i32_0 = arith.constant 0 : i32
    %c0_i32_1 = arith.constant 0 : i32
    return %c0_i32, %c0_i32_0 : i32, i32
  }
  func.func @transform_3(%arg0: i32) -> (i32, i32, i32, i32) {
    %c0_i32 = arith.constant 0 : i32
    %c0_i32_0 = arith.constant 0 : i32
    %c0_i32_1 = arith.constant 0 : i32
    %c0_i32_2 = arith.constant 0 : i32
    return %arg0, %c0_i32, %c0_i32_0, %c0_i32_1 : i32, i32, i32, i32
  }
}

module attributes {stable_mosaic.version = 11 : i64} {
  func.func @_conv_stage_kernel(%arg0: i32, %arg1: memref<1x5x5x128xf32, #tpu.memory_space<vmem>>, %arg2: memref<4x128x64xf32, #tpu.memory_space<vmem>>, %arg3: memref<1x64xf32, #tpu.memory_space<vmem>>, %arg4: memref<1x4x4x64xf32, #tpu.memory_space<vmem>>) attributes {dimension_semantics = [#tpu.dimension_semantics<parallel>], iteration_bounds = array<i64: 2>, scalar_prefetch = 0 : i64, scratch_operands = 0 : i64, tpu.core_type = #tpu.core_type<tc>, window_params = [{transform_indices = @transform_0, window_bounds = array<i64: 1, 5, 5, 128>}, {pipeline_mode = #tpu.pipeline_mode<synchronous>, transform_indices = @transform_1, window_bounds = array<i64: 4, 128, 64>}, {pipeline_mode = #tpu.pipeline_mode<synchronous>, transform_indices = @transform_2, window_bounds = array<i64: 1, 64>}, {transform_indices = @transform_3, window_bounds = array<i64: 1, 4, 4, 64>}]} {
    %cst = arith.constant 0.000000e+00 : f32
    %0 = vector.broadcast %cst : f32 to vector<16x64xf32>
    %c0 = arith.constant 0 : index
    %c0_0 = arith.constant 0 : index
    %c0_1 = arith.constant 0 : index
    %c0_2 = arith.constant 0 : index
    %1 = vector.load %arg1[%c0, %c0_0, %c0_1, %c0_2] : memref<1x5x5x128xf32, #tpu.memory_space<vmem>>, vector<1x4x4x128xf32>
    %2 = vector.shape_cast %1 : vector<1x4x4x128xf32> to vector<16x128xf32>
    %c0_3 = arith.constant 0 : index
    %c0_4 = arith.constant 0 : index
    %c0_5 = arith.constant 0 : index
    %3 = vector.load %arg2[%c0_3, %c0_4, %c0_5] : memref<4x128x64xf32, #tpu.memory_space<vmem>>, vector<1x128x64xf32>
    %4 = vector.shape_cast %3 : vector<1x128x64xf32> to vector<128x64xf32>
    %cst_6 = arith.constant dense<0.000000e+00> : vector<16x64xf32>
    %5 = tpu.matmul %2, %4, %cst_6 {dimension_numbers = #tpu.dot_dimension_numbers<[1], [0], [0], [1], [0, 0, 1, 1], [], []>} : vector<16x128xf32>, vector<128x64xf32>, vector<16x64xf32> -> vector<16x64xf32>
    %6 = arith.addf %0, %5 : vector<16x64xf32>
    %c0_7 = arith.constant 0 : index
    %c0_8 = arith.constant 0 : index
    %c1 = arith.constant 1 : index
    %c0_9 = arith.constant 0 : index
    %7 = vector.load %arg1[%c0_7, %c0_8, %c1, %c0_9] : memref<1x5x5x128xf32, #tpu.memory_space<vmem>>, vector<1x4x4x128xf32>
    %8 = vector.shape_cast %7 : vector<1x4x4x128xf32> to vector<16x128xf32>
    %c1_10 = arith.constant 1 : index
    %c0_11 = arith.constant 0 : index
    %c0_12 = arith.constant 0 : index
    %9 = vector.load %arg2[%c1_10, %c0_11, %c0_12] : memref<4x128x64xf32, #tpu.memory_space<vmem>>, vector<1x128x64xf32>
    %10 = vector.shape_cast %9 : vector<1x128x64xf32> to vector<128x64xf32>
    %cst_13 = arith.constant dense<0.000000e+00> : vector<16x64xf32>
    %11 = tpu.matmul %8, %10, %cst_13 {dimension_numbers = #tpu.dot_dimension_numbers<[1], [0], [0], [1], [0, 0, 1, 1], [], []>} : vector<16x128xf32>, vector<128x64xf32>, vector<16x64xf32> -> vector<16x64xf32>
    %12 = arith.addf %6, %11 : vector<16x64xf32>
    %c0_14 = arith.constant 0 : index
    %c1_15 = arith.constant 1 : index
    %c0_16 = arith.constant 0 : index
    %c0_17 = arith.constant 0 : index
    %13 = vector.load %arg1[%c0_14, %c1_15, %c0_16, %c0_17] : memref<1x5x5x128xf32, #tpu.memory_space<vmem>>, vector<1x4x4x128xf32>
    %14 = vector.shape_cast %13 : vector<1x4x4x128xf32> to vector<16x128xf32>
    %c2 = arith.constant 2 : index
    %c0_18 = arith.constant 0 : index
    %c0_19 = arith.constant 0 : index
    %15 = vector.load %arg2[%c2, %c0_18, %c0_19] : memref<4x128x64xf32, #tpu.memory_space<vmem>>, vector<1x128x64xf32>
    %16 = vector.shape_cast %15 : vector<1x128x64xf32> to vector<128x64xf32>
    %cst_20 = arith.constant dense<0.000000e+00> : vector<16x64xf32>
    %17 = tpu.matmul %14, %16, %cst_20 {dimension_numbers = #tpu.dot_dimension_numbers<[1], [0], [0], [1], [0, 0, 1, 1], [], []>} : vector<16x128xf32>, vector<128x64xf32>, vector<16x64xf32> -> vector<16x64xf32>
    %18 = arith.addf %12, %17 : vector<16x64xf32>
    %c0_21 = arith.constant 0 : index
    %c1_22 = arith.constant 1 : index
    %c1_23 = arith.constant 1 : index
    %c0_24 = arith.constant 0 : index
    %19 = vector.load %arg1[%c0_21, %c1_22, %c1_23, %c0_24] : memref<1x5x5x128xf32, #tpu.memory_space<vmem>>, vector<1x4x4x128xf32>
    %20 = vector.shape_cast %19 : vector<1x4x4x128xf32> to vector<16x128xf32>
    %c3 = arith.constant 3 : index
    %c0_25 = arith.constant 0 : index
    %c0_26 = arith.constant 0 : index
    %21 = vector.load %arg2[%c3, %c0_25, %c0_26] : memref<4x128x64xf32, #tpu.memory_space<vmem>>, vector<1x128x64xf32>
    %22 = vector.shape_cast %21 : vector<1x128x64xf32> to vector<128x64xf32>
    %cst_27 = arith.constant dense<0.000000e+00> : vector<16x64xf32>
    %23 = tpu.matmul %20, %22, %cst_27 {dimension_numbers = #tpu.dot_dimension_numbers<[1], [0], [0], [1], [0, 0, 1, 1], [], []>} : vector<16x128xf32>, vector<128x64xf32>, vector<16x64xf32> -> vector<16x64xf32>
    %24 = arith.addf %18, %23 : vector<16x64xf32>
    %c0_28 = arith.constant 0 : index
    %c0_29 = arith.constant 0 : index
    %25 = vector.load %arg3[%c0_28, %c0_29] : memref<1x64xf32, #tpu.memory_space<vmem>>, vector<1x64xf32>
    %26 = vector.broadcast %25 : vector<1x64xf32> to vector<16x64xf32>
    %27 = arith.addf %24, %26 : vector<16x64xf32>
    %cst_30 = arith.constant 0.000000e+00 : f32
    %28 = vector.broadcast %cst_30 : f32 to vector<16x64xf32>
    %29 = arith.cmpf oge, %27, %28 : vector<16x64xf32>
    %cst_31 = arith.constant 2.000000e-01 : f32
    %30 = vector.broadcast %cst_31 : f32 to vector<16x64xf32>
    %31 = arith.mulf %30, %27 : vector<16x64xf32>
    %32 = arith.select %29, %27, %31 : vector<16x64xi1>, vector<16x64xf32>
    %33 = vector.shape_cast %32 : vector<16x64xf32> to vector<1x4x4x64xf32>
    %c0_32 = arith.constant 0 : index
    %c0_33 = arith.constant 0 : index
    %c0_34 = arith.constant 0 : index
    %c0_35 = arith.constant 0 : index
    %34 = vector.load %arg4[%c0_32, %c0_33, %c0_34, %c0_35] : memref<1x4x4x64xf32, #tpu.memory_space<vmem>>, vector<1x4x4x64xf32>
    tpu.vector_store %arg4[%c0_32, %c0_33, %c0_34, %c0_35], %33 {strides = array<i32>} : memref<1x4x4x64xf32, #tpu.memory_space<vmem>>, vector<1x4x4x64xf32>,
    return
  }
  func.func @transform_0(%arg0: i32) -> (i32, i32, i32, i32) {
    %c0_i32 = arith.constant 0 : i32
    %c0_i32_0 = arith.constant 0 : i32
    %c0_i32_1 = arith.constant 0 : i32
    %c0_i32_2 = arith.constant 0 : i32
    return %arg0, %c0_i32, %c0_i32_0, %c0_i32_1 : i32, i32, i32, i32
  }
  func.func @transform_1(%arg0: i32) -> (i32, i32, i32) {
    %c0_i32 = arith.constant 0 : i32
    %c0_i32_0 = arith.constant 0 : i32
    %c0_i32_1 = arith.constant 0 : i32
    %c0_i32_2 = arith.constant 0 : i32
    return %c0_i32, %c0_i32_0, %c0_i32_1 : i32, i32, i32
  }
  func.func @transform_2(%arg0: i32) -> (i32, i32) {
    %c0_i32 = arith.constant 0 : i32
    %c0_i32_0 = arith.constant 0 : i32
    %c0_i32_1 = arith.constant 0 : i32
    return %c0_i32, %c0_i32_0 : i32, i32
  }
  func.func @transform_3(%arg0: i32) -> (i32, i32, i32, i32) {
    %c0_i32 = arith.constant 0 : i32
    %c0_i32_0 = arith.constant 0 : i32
    %c0_i32_1 = arith.constant 0 : i32
    %c0_i32_2 = arith.constant 0 : i32
    return %arg0, %c0_i32, %c0_i32_0, %c0_i32_1 : i32, i32, i32, i32
  }
}

</mosaic_0001>

<bundles_post_ra>
// kernel: downsampling_forward.2
= control target key start
LH: loop header
LB: loop body
LE: loop exit
PB: predicated region body
PF: predicated region fallthrough
CT: control target
= control target key end

     0   :  { %s695_s12 = smov 0   ;;  %s823_s0 = inlined_call_operand.vmem [shape: f32[2,9,9,16], index: 0, kind: input, shape index: {}]   ;;  %s824_s1 = inlined_call_operand.vmem [shape: f32[4,16,32], index: 1, kind: input, shape index: {}]   ;;  %s825_s2 = inlined_call_operand.vmem [shape: f32[1,32], index: 2, kind: input, shape index: {}]   ;;  %s826_s3 = inlined_call_operand.vmem [shape: f32[2,8,8,32], index: 3, kind: output, shape index: {}]  }
   0x1 LB: > { %s592_s13 = sadd.s32 4294967295, %s673_s12   ;;  %p596_p0 = scmp.ge.s32.totalorder %s673_s12, 1  ;;  %s673_s12 = sphi %s695_s12, %s13_s12  }
   0x2   : > { %p137_p1 = scmp.lt.s32.totalorder %s673_s12, 3 }
   0x4   : > { %p138_p2 = pnand %p596_p0, %p137_p1 }
   0x5   : > { %p161_p3 = scmp.lt.s32.totalorder (!%p138_p2), %s592_s13, 1 }
   0x6   : > { %141 = sbr.rel (%p138_p2) target bundleno = 214 (0xd6), region = 32 }
   0xb   : > { %v627_v0 = vld [vmem:[%s824_s1 + $0x28] sm:$0xff]  ;;  %v626_v1 = vld [vmem:[%s824_s1 + $0x20] sm:$0xff]  ;;  %v645_v2 = vld [vmem:[%s824_s1 + $0x38] sm:$0xff]  ;;  %s828_s13 = smov (!%p161_p3, %s592_s13), 1  ;;  %vm192_vm0 = vcmask 130048   ;;  %vm528_vm2 = vcmask 261120  }
   0xc   : > { %373 = vmatpush.msra.mxu2 %v627_v0  ;;  %457 = vmatpush.msra.mxu3 %v645_v2  ;;  %v601_v3 = vld [vmem:[%s824_s1 + $0x18] sm:$0xff]  ;;  %v180_v4 = vld [vmem:[%s824_s1 + $0x8] sm:$0xff]  ;;  %v644_v5 = vld [vmem:[%s824_s1 + $0x30] sm:$0xff]  ;;  %s657_s30 = smul.u32 144, %s828_s13  ;;  %s656_s9 = sshll.u32 %s828_s13, 6 }
   0xd   : > { %231 = vmatpush.msra.mxu0 %v601_v3  ;;  %296 = vmatpush.msra.mxu1 %v180_v4  ;;  %v600_v6 = vld [vmem:[%s824_s1 + $0x10] sm:$0xff]  ;;  %v179_v7 = vld [vmem:[%s824_s1] sm:$0xff]  ;;  %s795_s14 = scalar_lea.vmem %s826_s3, %s656_s9 }
   0xe   : > { %374 = vmatpush.msra.mxu2 %v626_v1  ;;  %458 = vmatpush.msra.mxu3 %v644_v5  ;;  %s733_s6 = scalar_lea.vmem %s823_s0, %s657_s30  ;;  %v788_v32 = vld [vmem:[%s825_s2] ss:$0 sm:$0xff] }
   0xf   : > { %232 = vmatpush.msra.mxu0 %v600_v6  ;;  %297 = vmatpush.msra.mxu1 %v179_v7  ;;  %v618_v8 = vld [vmem:[%s733_s6 + $0x10] sm:$0xff]  ;;  %v181_v10 = vld [vmem:[%s733_s6 + $0x1] sm:$0xff] }
  0x10   : > { %v636_v9 = vld [vmem:[%s733_s6 + $0x11] sm:$0xff]  ;;  %628 = vmatmul.msk.f32.vlgmr.msra.gmra.mxu2 %vm192_vm0, %v618_v8  ;;  %v171_v11 = vld [vmem:[%s733_s6] sm:$0xff]  ;;  %602 = vmatmul.msk.f32.vlgmr.msra.gmra.mxu0 %vm192_vm0, %v181_v10 }
  0x11   : > { %646 = vmatmul.msk.f32.vlgmr.msra.gmra.mxu3 %vm192_vm0, %v636_v9  ;;  %610 = vmatmul.msk.f32.vlgmr.msra.gmra.mxu1 %vm192_vm0, %v171_v11  ;;  %v619_v12 = vld [vmem:[%s733_s6 + $0x20] sm:$0xff]  ;;  %v620_v14 = vld [vmem:[%s733_s6 + $0x30] sm:$0xff] }
  0x12   : > { %v637_v13 = vld [vmem:[%s733_s6 + $0x21] sm:$0xff]  ;;  %v638_v15 = vld [vmem:[%s733_s6 + $0x31] sm:$0xff] }
  0x13   : > { %v621_v16 = vld [vmem:[%s733_s6 + $0x40] sm:$0xff]  ;;  %v622_v18 = vld [vmem:[%s733_s6 + $0x50] sm:$0xff] }
  0x14   : > { %v639_v17 = vld [vmem:[%s733_s6 + $0x41] sm:$0xff]  ;;  %v640_v19 = vld [vmem:[%s733_s6 + $0x51] sm:$0xff] }
  0x15   : > { %v623_v20 = vld [vmem:[%s733_s6 + $0x60] sm:$0xff]  ;;  %v624_v22 = vld [vmem:[%s733_s6 + $0x70] sm:$0xff] }
  0x16   : > { %v641_v21 = vld [vmem:[%s733_s6 + $0x61] sm:$0xff]  ;;  %v642_v23 = vld [vmem:[%s733_s6 + $0x71] sm:$0xff] }
  0x17   : > { %v625_v24 = vld [vmem:[%s733_s6 + $0x80] sm:$0xff] }
  0x18   : > { %629 = vmatmul.msk.f32.gmra.mxu2 %vm192_vm0, %v619_v12  ;;  %603 = vmatmul.msk.f32.gmra.mxu0 %vm192_vm0, %v636_v9  ;;  %v643_v25 = vld [vmem:[%s733_s6 + $0x81] sm:$0xff] }
  0x19   : > { %647 = vmatmul.msk.f32.gmra.mxu3 %vm192_vm0, %v637_v13  ;;  %611 = vmatmul.msk.f32.gmra.mxu1 %vm192_vm0, %v618_v8 }
  0x20   : > { %630 = vmatmul.msk.f32.gmra.mxu2 %vm192_vm0, %v620_v14  ;;  %604 = vmatmul.msk.f32.gmra.mxu0 %vm192_vm0, %v637_v13 }
  0x21   : > { %648 = vmatmul.msk.f32.gmra.mxu3 %vm192_vm0, %v638_v15  ;;  %612 = vmatmul.msk.f32.gmra.mxu1 %vm192_vm0, %v619_v12 }
  0x28   : > { %631 = vmatmul.msk.f32.gmra.mxu2 %vm192_vm0, %v621_v16  ;;  %605 = vmatmul.msk.f32.gmra.mxu0 %vm192_vm0, %v638_v15 }
  0x29   : > { %649 = vmatmul.msk.f32.gmra.mxu3 %vm192_vm0, %v639_v17  ;;  %613 = vmatmul.msk.f32.gmra.mxu1 %vm192_vm0, %v620_v14 }
  0x30   : > { %632 = vmatmul.msk.f32.gmra.mxu2 %vm192_vm0, %v622_v18  ;;  %606 = vmatmul.msk.f32.gmra.mxu0 %vm192_vm0, %v639_v17 }
  0x31   : > { %650 = vmatmul.msk.f32.gmra.mxu3 %vm192_vm0, %v640_v19  ;;  %614 = vmatmul.msk.f32.gmra.mxu1 %vm192_vm0, %v621_v16 }
  0x38   : > { %633 = vmatmul.msk.f32.gmra.mxu2 %vm192_vm0, %v623_v20  ;;  %607 = vmatmul.msk.f32.gmra.mxu0 %vm192_vm0, %v640_v19 }
  0x39   : > { %651 = vmatmul.msk.f32.gmra.mxu3 %vm192_vm0, %v641_v21  ;;  %615 = vmatmul.msk.f32.gmra.mxu1 %vm192_vm0, %v622_v18 }
  0x40   : > { %634 = vmatmul.msk.f32.gmra.mxu2 %vm192_vm0, %v624_v22  ;;  %608 = vmatmul.msk.f32.gmra.mxu0 %vm192_vm0, %v641_v21 }
  0x41   : > { %652 = vmatmul.msk.f32.gmra.mxu3 %vm192_vm0, %v642_v23  ;;  %616 = vmatmul.msk.f32.gmra.mxu1 %vm192_vm0, %v623_v20 }
  0x48   : > { %635 = vmatmul.msk.f32.gmra.mxu2 %vm192_vm0, %v625_v24  ;;  %609 = vmatmul.msk.f32.gmra.mxu0 %vm192_vm0, %v642_v23 }
  0x49   : > { %653 = vmatmul.msk.f32.gmra.mxu3 %vm192_vm0, %v643_v25  ;;  %617 = vmatmul.msk.f32.gmra.mxu1 %vm192_vm0, %v624_v22 }
  0x8d   : > { %v234_v26 = vpop.f32.mrf.mxu0 }
  0x8e   : > { %v299_v27 = vpop.f32.mrf.mxu1 }
  0x8f   : > { %v300_v28 = vadd.f32 %v299_v27, %v234_v26 }
  0x93   : > { %v376_v29 = vpop.f32.mrf.mxu2 }
  0x94   : > { %v460_v30 = vpop.f32.mrf.mxu3  ;;  %v400_v31 = vadd.f32 %v376_v29, %v300_v28 }
  0x95   : > { %v237_v34 = vpop.f32.mrf.mxu0 }
  0x96   : > { %v484_v33 = vadd.f32 %v460_v30, %v400_v31  ;;  %v302_v35 = vpop.f32.mrf.mxu1 }
  0x97   : > { %v303_v37 = vadd.f32 %v302_v35, %v237_v34 }
  0x98   : > { %v496_v36 = vadd.f32 %v788_v32, %v484_v33 }
  0x9a   : > { %vm504_vm1 = vcmp.ge.f32.partialorder %v496_v36, 0.0  ;;  %v512_v38 = vmul.f32 0.2, %v496_v36 }
  0x9b   : > { %v379_v39 = vpop.f32.mrf.mxu2 }
  0x9c   : > { %v463_v40 = vpop.f32.mrf.mxu3  ;;  %v520_v41 = vsel %vm504_vm1, %v496_v36, %v512_v38  ;;  %v401_v42 = vadd.f32 %v379_v39, %v303_v37 }
  0x9d   : > { %529 = vst.msk [vmem:[%s795_s14] sm:$0xff] %vm528_vm2, %v520_v41  ;;  %v240_v44 = vpop.f32.mrf.mxu0 }
  0x9e   : > { %v485_v43 = vadd.f32 %v463_v40, %v401_v42  ;;  %v305_v45 = vpop.f32.mrf.mxu1 }
  0x9f   : > { %v306_v47 = vadd.f32 %v305_v45, %v240_v44 }
  0xa0   : > { %v497_v46 = vadd.f32 %v788_v32, %v485_v43 }
  0xa2   : > { %vm505_vm3 = vcmp.ge.f32.partialorder %v497_v46, 0.0  ;;  %v513_v48 = vmul.f32 0.2, %v497_v46 }
  0xa3   : > { %v382_v49 = vpop.f32.mrf.mxu2 }
  0xa4   : > { %v466_v50 = vpop.f32.mrf.mxu3  ;;  %v521_v51 = vsel %vm505_vm3, %v497_v46, %v513_v48  ;;  %v402_v52 = vadd.f32 %v382_v49, %v306_v47 }
  0xa5   : > { %530 = vst.msk [vmem:[%s795_s14 + $0x8] sm:$0xff] %vm528_vm2, %v521_v51  ;;  %v243_v54 = vpop.f32.mrf.mxu0 }
  0xa6   : > { %v486_v53 = vadd.f32 %v466_v50, %v402_v52  ;;  %v308_v55 = vpop.f32.mrf.mxu1 }
  0xa7   : > { %v309_v57 = vadd.f32 %v308_v55, %v243_v54 }
  0xa8   : > { %v498_v56 = vadd.f32 %v788_v32, %v486_v53 }
  0xaa   : > { %vm506_vm4 = vcmp.ge.f32.partialorder %v498_v56, 0.0  ;;  %v514_v58 = vmul.f32 0.2, %v498_v56 }
  0xab   : > { %v385_v59 = vpop.f32.mrf.mxu2 }
  0xac   : > { %v469_v60 = vpop.f32.mrf.mxu3  ;;  %v522_v61 = vsel %vm506_vm4, %v498_v56, %v514_v58  ;;  %v403_v62 = vadd.f32 %v385_v59, %v309_v57 }
  0xad   : > { %531 = vst.msk [vmem:[%s795_s14 + $0x10] sm:$0xff] %vm528_vm2, %v522_v61  ;;  %v246_v0 = vpop.f32.mrf.mxu0 }
  0xae   : > { %v487_v63 = vadd.f32 %v469_v60, %v403_v62  ;;  %v311_v1 = vpop.f32.mrf.mxu1 }
  0xaf   : > { %v312_v3 = vadd.f32 %v311_v1, %v246_v0 }
  0xb0   : > { %v499_v2 = vadd.f32 %v788_v32, %v487_v63 }
  0xb2   : > { %vm507_vm5 = vcmp.ge.f32.partialorder %v499_v2, 0.0  ;;  %v515_v4 = vmul.f32 0.2, %v499_v2 }
  0xb3   : > { %v388_v5 = vpop.f32.mrf.mxu2 }
  0xb4   : > { %v472_v6 = vpop.f32.mrf.mxu3  ;;  %v523_v7 = vsel %vm507_vm5, %v499_v2, %v515_v4  ;;  %v404_v8 = vadd.f32 %v388_v5, %v312_v3 }
  0xb5   : > { %532 = vst.msk [vmem:[%s795_s14 + $0x18] sm:$0xff] %vm528_vm2, %v523_v7  ;;  %v249_v10 = vpop.f32.mrf.mxu0 }
  0xb6   : > { %v488_v9 = vadd.f32 %v472_v6, %v404_v8  ;;  %v314_v11 = vpop.f32.mrf.mxu1 }
  0xb7   : > { %v315_v13 = vadd.f32 %v314_v11, %v249_v10 }
  0xb8   : > { %v500_v12 = vadd.f32 %v788_v32, %v488_v9 }
  0xba   : > { %vm508_vm6 = vcmp.ge.f32.partialorder %v500_v12, 0.0  ;;  %v516_v14 = vmul.f32 0.2, %v500_v12 }
  0xbb   : > { %v391_v15 = vpop.f32.mrf.mxu2 }
  0xbc   : > { %v475_v16 = vpop.f32.mrf.mxu3  ;;  %v524_v17 = vsel %vm508_vm6, %v500_v12, %v516_v14  ;;  %v405_v18 = vadd.f32 %v391_v15, %v315_v13 }
  0xbd   : > { %533 = vst.msk [vmem:[%s795_s14 + $0x20] sm:$0xff] %vm528_vm2, %v524_v17  ;;  %v252_v20 = vpop.f32.mrf.mxu0 }
  0xbe   : > { %v489_v19 = vadd.f32 %v475_v16, %v405_v18  ;;  %v317_v21 = vpop.f32.mrf.mxu1 }
  0xbf   : > { %v318_v23 = vadd.f32 %v317_v21, %v252_v20 }
  0xc0   : > { %v501_v22 = vadd.f32 %v788_v32, %v489_v19 }
  0xc2   : > { %vm509_vm7 = vcmp.ge.f32.partialorder %v501_v22, 0.0  ;;  %v517_v24 = vmul.f32 0.2, %v501_v22 }
  0xc3   : > { %v394_v25 = vpop.f32.mrf.mxu2 }
  0xc4   : > { %v478_v26 = vpop.f32.mrf.mxu3  ;;  %v525_v27 = vsel %vm509_vm7, %v501_v22, %v517_v24  ;;  %v406_v28 = vadd.f32 %v394_v25, %v318_v23 }
  0xc5   : > { %534 = vst.msk [vmem:[%s795_s14 + $0x28] sm:$0xff] %vm528_vm2, %v525_v27  ;;  %v255_v30 = vpop.f32.mrf.mxu0 }
  0xc6   : > { %v490_v29 = vadd.f32 %v478_v26, %v406_v28  ;;  %v320_v31 = vpop.f32.mrf.mxu1 }
  0xc7   : > { %v321_v34 = vadd.f32 %v320_v31, %v255_v30 }
  0xc8   : > { %v502_v33 = vadd.f32 %v788_v32, %v490_v29 }
  0xca   : > { %vm510_vm8 = vcmp.ge.f32.partialorder %v502_v33, 0.0  ;;  %v518_v35 = vmul.f32 0.2, %v502_v33 }
  0xcb   : > { %v397_v36 = vpop.f32.mrf.mxu2 }
  0xcc   : > { %v481_v37 = vpop.f32.mrf.mxu3  ;;  %v526_v38 = vsel %vm510_vm8, %v502_v33, %v518_v35  ;;  %v407_v39 = vadd.f32 %v397_v36, %v321_v34 }
  0xcd   : > { %535 = vst.msk [vmem:[%s795_s14 + $0x30] sm:$0xff] %vm528_vm2, %v526_v38 }
  0xce   : > { %v491_v40 = vadd.f32 %v481_v37, %v407_v39 }
  0xd0   : > { %v503_v41 = vadd.f32 %v788_v32, %v491_v40 }
  0xd2   : > { %vm511_vm9 = vcmp.ge.f32.partialorder %v503_v41, 0.0  ;;  %v519_v42 = vmul.f32 0.2, %v503_v41 }
  0xd4   : > { %v527_v43 = vsel %vm511_vm9, %v503_v41, %v519_v42 }
  0xd5   : > { %536 = vst.msk [vmem:[%s795_s14 + $0x38] sm:$0xff] %vm528_vm2, %v527_v43 }
  0xd6 PF: > { %s13_s12 = sadd.s32 1, %s673_s12  }
  0xd7   : > { %p10_p4 = scmp.ge.s32.totalorder %s13_s12, 4  }
  0xd9   :  { %12 = sbr.rel (!%p10_p4) target bundleno = 1 (0x1), region = 66 }

// kernel: downsampling_forward.3
= control target key start
LH: loop header
LB: loop body
LE: loop exit
PB: predicated region body
PF: predicated region fallthrough
CT: control target
= control target key end

     0   :  { %8 = vsyncpa [#allocation3], 0  ;;  %s1018_s0 = inlined_call_operand.vmem [shape: f32[2,5,5,128], index: 0, kind: input, shape index: {}]   ;;  %s1019_s1 = inlined_call_operand.vmem [shape: f32[4,128,64], index: 1, kind: input, shape index: {}]   ;;  %s1020_s2 = inlined_call_operand.vmem [shape: f32[1,64], index: 2, kind: input, shape index: {}]   ;;  %s1021_s3 = inlined_call_operand.hbm [shape: f32[2,4,4,64], index: 3, kind: output, shape index: {}]  }
   0x1   :  { %10 = vsyncpa [#allocation3 + $0x1], 0  ;;  %s707_s12 = smov 0   ;;  %s709_s13 = smov 0  }
   0x2   :  { %s711_s14 = smov 0   ;;  %s713_s15 = smov 0  }
   0x3 LB: > { %s728_s16 = sadd.s32 4294967295, %s683_s15   ;;  %s510_s17 = sadd.s32 4294967294, %s683_s15   ;;  %s683_s15 = sphi %s713_s15, %s1027_s15   ;;  %s679_s14 = sphi %s711_s14, %s1026_s14   ;;  %s675_s13 = sphi %s709_s13, %s1025_s13   ;;  %s671_s12 = sphi %s707_s12, %s1024_s12  }
   0x4   : > { %s732_s18 = sadd.s32 1, %s683_s15   ;;  %s91_s19 = sadd.s32 1, %s679_s14 }
   0x5   : > { %s88_s20 = ssub.s32 %s683_s15, %s732_s18  ;;  %p101_p0 = scmp.ne.s32.totalorder %s679_s14, %s675_s13 }
   0x6   : > { %p89_p1 = scmp.eq.s32.totalorder %s88_s20, 0  ;;  %p102_p2 = scmp.eq.s32.totalorder %s728_s16, 1 }
   0x7   : > { %p107_p3 = scmp.ne.s32.totalorder %s675_s13, %s671_s12  ;;  %p108_p4 = scmp.eq.s32.totalorder %s510_s17, 1 }
   0x8   : > { %s743_s21 = scalar_select %p89_p1, %s679_s14, %s91_s19  }
   0x9   : > { %p745_p5 = por %p102_p2, %p101_p0  ;;  %p749_p6 = por %p108_p4, %p107_p3 }
   0xa   : > { %p513_p7 = scmp.ge.s32.totalorder %s683_s15, 1  ;;  %p140_p8 = scmp.lt.s32.totalorder %s683_s15, 3 }
   0xc   : > { %p141_p9 = pnand %p513_p7, %p140_p8 }
   0xd   : > { %p164_p10 = scmp.lt.s32.totalorder (!%p141_p9), %s728_s16, 1  ;;  %s161_s6 = sand.u32 (!%p141_p9), 1, %s675_s13  }
   0xe   : > { %144 = sbr.rel (%p141_p9) target bundleno = 224 (0xe0), region = 32  ;;  %s514_s10 = sshll.u32 (!%p141_p9), %s161_s6, 4 }
   0xf   : > { %s577_s17 = sshll.u32 (!%p141_p9), %s728_s16, 4  ;;  %s163_s19 = scalar_lea.vmem (!%p141_p9), [#allocation2], %s514_s10 }
  0x10   : > { %s444_s25 = scalar_lea.hbm (!%p141_p9), %s1021_s3, %s577_s17  ;;  %s445_s26 = sshll.u32 (!%p141_p9), %s163_s19, 4  ;;  %s446_s26 = int_to_ptr.vmem [resolvable:$true] %s445_s26 }
  0x11   : > { %s641_s30 = scalar_lea.hbm (!%p141_p9), %s1021_s3, 32 }
  0x13   : > { %v551_v0 = vld [vmem:[%s1019_s1 + $0x178] sm:$0xff]  ;;  %v550_v1 = vld [vmem:[%s1019_s1 + $0x170] sm:$0xff]  ;;  %v549_v5 = vld [vmem:[%s1019_s1 + $0x168] sm:$0xff]  ;;  %s831_s9 = scalar_select %p164_p10, %s728_s16, 1  ;;  %vm427_vm1 = vcmask 519168  }
  0x14   : > { %v571_v2 = vld [vmem:[%s1019_s1 + $0x1f8] sm:$0xff]  ;;  %323 = vmatpush.msra.mxu2 %v551_v0  ;;  %v570_v6 = vld [vmem:[%s1019_s1 + $0x1f0] sm:$0xff]  ;;  %v569_v9 = vld [vmem:[%s1019_s1 + $0x1e8] sm:$0xff]  ;;  %s433_s16 = scalar_lea.sflag [#allocation3], %s161_s6 }
  0x15   : > { %384 = vmatpush.msra.mxu3 %v571_v2  ;;  %v531_v3 = vld [vmem:[%s1019_s1 + $0xf8] sm:$0xff]  ;;  %v530_v7 = vld [vmem:[%s1019_s1 + $0xf0] sm:$0xff]  ;;  %v529_v10 = vld [vmem:[%s1019_s1 + $0xe8] sm:$0xff]  ;;  %s578_s8 = smul.u32 40, %s831_s9 }
  0x16   : > { %v188_v4 = vld [vmem:[%s1019_s1 + $0x78] sm:$0xff]  ;;  %225 = vmatpush.msra.mxu0 %v531_v3  ;;  %v187_v8 = vld [vmem:[%s1019_s1 + $0x70] sm:$0xff]  ;;  %324 = vmatpush.msra.mxu2 %v550_v1  ;;  %v548_v11 = vld [vmem:[%s1019_s1 + $0x160] sm:$0xff] }
  0x17   : > { %263 = vmatpush.msra.mxu1 %v188_v4  ;;  %385 = vmatpush.msra.mxu3 %v570_v6  ;;  %v186_v12 = vld [vmem:[%s1019_s1 + $0x68] sm:$0xff]  ;;  %v568_v13 = vld [vmem:[%s1019_s1 + $0x1e0] sm:$0xff]  ;;  %v547_v16 = vld [vmem:[%s1019_s1 + $0x158] sm:$0xff]  ;;  %s885_s11 = scalar_lea.vmem %s1018_s0, %s578_s8  ;;  %s447_s8 = sshll.u32 %s444_s25, 4  ;;  %s448_s8 = int_to_ptr.hbm [resolvable:$true] %s447_s8 }
  0x18   : > { %226 = vmatpush.msra.mxu0 %v530_v7  ;;  %325 = vmatpush.msra.mxu2 %v549_v5  ;;  %v528_v14 = vld [vmem:[%s1019_s1 + $0xe0] sm:$0xff]  ;;  %v567_v17 = vld [vmem:[%s1019_s1 + $0x1d8] sm:$0xff]  ;;  %v546_v20 = vld [vmem:[%s1019_s1 + $0x150] sm:$0xff]  ;;  %s635_s9 = sshra.s32 %s448_s8, 4  ;;  %s636_s9 = int_to_ptr.hbm [resolvable:$true] %s635_s9 }
  0x19   : > { %264 = vmatpush.msra.mxu1 %v187_v8  ;;  %386 = vmatpush.msra.mxu3 %v569_v9  ;;  %v185_v15 = vld [vmem:[%s1019_s1 + $0x60] sm:$0xff]  ;;  %v527_v18 = vld [vmem:[%s1019_s1 + $0xd8] sm:$0xff]  ;;  %v566_v21 = vld [vmem:[%s1019_s1 + $0x1d0] sm:$0xff]  ;;  %s637_s27 = scalar_lea.hbm %s636_s9, 16  ;;  %p642_p0 = scmp.lt.s32.totalorder %s636_s9, %s1021_s3 }
  0x1a   : > { %227 = vmatpush.msra.mxu0 %v529_v10  ;;  %326 = vmatpush.msra.mxu2 %v548_v11  ;;  %v184_v19 = vld [vmem:[%s1019_s1 + $0x58] sm:$0xff]  ;;  %v526_v22 = vld [vmem:[%s1019_s1 + $0xd0] sm:$0xff]  ;;  %v545_v24 = vld [vmem:[%s1019_s1 + $0x148] sm:$0xff]  ;;  %p638_p11 = scmp.ne.s32.totalorder %s636_s9, %s637_s27  ;;  %p643_p1 = scmp.lt.s32.totalorder %s641_s30, %s637_s27 }
  0x1b   : > { %265 = vmatpush.msra.mxu1 %v186_v12  ;;  %387 = vmatpush.msra.mxu3 %v568_v13  ;;  %v183_v23 = vld [vmem:[%s1019_s1 + $0x50] sm:$0xff]  ;;  %v565_v25 = vld [vmem:[%s1019_s1 + $0x1c8] sm:$0xff]  ;;  %v544_v28 = vld [vmem:[%s1019_s1 + $0x140] sm:$0xff] }
  0x1c   : > { %228 = vmatpush.msra.mxu0 %v528_v14  ;;  %327 = vmatpush.msra.mxu2 %v547_v16  ;;  %v525_v26 = vld [vmem:[%s1019_s1 + $0xc8] sm:$0xff]  ;;  %v564_v29 = vld [vmem:[%s1019_s1 + $0x1c0] sm:$0xff]  ;;  %v543_v32 = vld [vmem:[%s1019_s1 + $0x138] sm:$0xff]  ;;  %p639_p12 = pnand %p638_p11, %p745_p5  ;;  %p644_p2 = por %p643_p1, %p642_p0 }
  0x1d   : > { %266 = vmatpush.msra.mxu1 %v185_v15  ;;  %388 = vmatpush.msra.mxu3 %v567_v17  ;;  %v182_v27 = vld [vmem:[%s1019_s1 + $0x48] sm:$0xff]  ;;  %v524_v30 = vld [vmem:[%s1019_s1 + $0xc0] sm:$0xff]  ;;  %v563_v33 = vld [vmem:[%s1019_s1 + $0x1b8] sm:$0xff] }
  0x1e   : > { %229 = vmatpush.msra.mxu0 %v527_v18  ;;  %328 = vmatpush.msra.mxu2 %v546_v20  ;;  %v181_v31 = vld [vmem:[%s1019_s1 + $0x40] sm:$0xff]  ;;  %v523_v34 = vld [vmem:[%s1019_s1 + $0xb8] sm:$0xff]  ;;  %v542_v36 = vld [vmem:[%s1019_s1 + $0x130] sm:$0xff]  ;;  %p640_p13 = pneg %p639_p12 }
  0x1f   : > { %267 = vmatpush.msra.mxu1 %v184_v19  ;;  %389 = vmatpush.msra.mxu3 %v566_v21  ;;  %v180_v35 = vld [vmem:[%s1019_s1 + $0x38] sm:$0xff]  ;;  %v562_v37 = vld [vmem:[%s1019_s1 + $0x1b0] sm:$0xff]  ;;  %v541_v40 = vld [vmem:[%s1019_s1 + $0x128] sm:$0xff] }
  0x20   : > { %230 = vmatpush.msra.mxu0 %v526_v22  ;;  %329 = vmatpush.msra.mxu2 %v545_v24  ;;  %v522_v38 = vld [vmem:[%s1019_s1 + $0xb0] sm:$0xff]  ;;  %v561_v41 = vld [vmem:[%s1019_s1 + $0x1a8] sm:$0xff]  ;;  %v540_v42 = vld [vmem:[%s1019_s1 + $0x120] sm:$0xff]  ;;  %p645_p3 = pnand %p644_p2, %p640_p13 }
  0x21   : > { %268 = vmatpush.msra.mxu1 %v183_v23  ;;  %390 = vmatpush.msra.mxu3 %v565_v25  ;;  %v179_v39 = vld [vmem:[%s1019_s1 + $0x30] sm:$0xff]  ;;  %v521_v43 = vld [vmem:[%s1019_s1 + $0xa8] sm:$0xff]  ;;  %v560_v45 = vld [vmem:[%s1019_s1 + $0x1a0] sm:$0xff] }
  0x22   : > { %231 = vmatpush.msra.mxu0 %v525_v26  ;;  %330 = vmatpush.msra.mxu2 %v544_v28  ;;  %v178_v44 = vld [vmem:[%s1019_s1 + $0x28] sm:$0xff]  ;;  %v189_v46 = vld [vmem:[%s885_s11 + $0x1] sm:$0xf]  ;;  %v539_v50 = vld [vmem:[%s1019_s1 + $0x118] sm:$0xff] }
  0x23   : > { %269 = vmatpush.msra.mxu1 %v182_v27  ;;  %391 = vmatpush.msra.mxu3 %v564_v29  ;;  %v190_v47 = vld [vmem:[%s885_s11 + $0x9] sm:$0xf]  ;;  %v520_v48 = vld [vmem:[%s1019_s1 + $0xa0] sm:$0xff]  ;;  %214 = vst [vmem:[#allocation1] ss:$2 sm:$0xff] %v189_v46  ;;  %v559_v51 = vld [vmem:[%s1019_s1 + $0x198] sm:$0xff] }
  0x24   : > { %232 = vmatpush.msra.mxu0 %v524_v30  ;;  %331 = vmatpush.msra.mxu2 %v543_v32  ;;  %v177_v49 = vld [vmem:[%s1019_s1 + $0x20] sm:$0xff]  ;;  %216 = vst [vmem:[#allocation1 + $0x1] ss:$2 sm:$0xff] %v190_v47  ;;  %v519_v52 = vld [vmem:[%s1019_s1 + $0x98] sm:$0xff]  ;;  %v538_v54 = vld [vmem:[%s1019_s1 + $0x110] sm:$0xff] }
  0x25   : > { %270 = vmatpush.msra.mxu1 %v181_v31  ;;  %392 = vmatpush.msra.mxu3 %v563_v33  ;;  %v176_v53 = vld [vmem:[%s1019_s1 + $0x18] sm:$0xff]  ;;  %v558_v55 = vld [vmem:[%s1019_s1 + $0x190] sm:$0xff]  ;;  %v537_v60 = vld [vmem:[%s1019_s1 + $0x108] sm:$0xff] }
  0x26   : > { %233 = vmatpush.msra.mxu0 %v523_v34  ;;  %332 = vmatpush.msra.mxu2 %v542_v36  ;;  %v191_v56 = vld [vmem:[%s885_s11 + $0x11] sm:$0xf]  ;;  %v192_v59 = vld [vmem:[%s885_s11 + $0x19] sm:$0xf]  ;;  %v557_v61 = vld [vmem:[%s1019_s1 + $0x188] sm:$0xff] }
  0x27   : > { %271 = vmatpush.msra.mxu1 %v180_v35  ;;  %393 = vmatpush.msra.mxu3 %v562_v37  ;;  %v518_v57 = vld [vmem:[%s1019_s1 + $0x90] sm:$0xff]  ;;  %218 = vst [vmem:[#allocation1 + $0x10] ss:$2 sm:$0xff] %v191_v56  ;;  %v169_v62 = vld [vmem:[%s885_s11] sm:$0xf]  ;;  %v517_v63 = vld [vmem:[%s1019_s1 + $0x88] sm:$0xff] }
  0x28   : > { %234 = vmatpush.msra.mxu0 %v522_v38  ;;  %333 = vmatpush.msra.mxu2 %v541_v40  ;;  %v175_v58 = vld [vmem:[%s1019_s1 + $0x10] sm:$0xff]  ;;  %220 = vst [vmem:[#allocation1 + $0x11] ss:$2 sm:$0xff] %v192_v59  ;;  %v174_v0 = vld [vmem:[%s1019_s1 + $0x8] sm:$0xff]  ;;  %v536_v1 = vld [vmem:[%s1019_s1 + $0x100] sm:$0xff] }
  0x29   : > { %272 = vmatpush.msra.mxu1 %v179_v39  ;;  %394 = vmatpush.msra.mxu3 %v561_v41  ;;  %v170_v2 = vld [vmem:[%s885_s11 + $0x8] sm:$0xf]  ;;  %v556_v3 = vld [vmem:[%s1019_s1 + $0x180] sm:$0xff]  ;;  %v171_v7 = vld [vmem:[%s885_s11 + $0x10] sm:$0xf] }
  0x2a   : > { %235 = vmatpush.msra.mxu0 %v521_v43  ;;  %334 = vmatpush.msra.mxu2 %v540_v42  ;;  %v516_v5 = vld [vmem:[%s1019_s1 + $0x80] sm:$0xff]  ;;  %v172_v8 = vld [vmem:[%s885_s11 + $0x18] sm:$0xf]  ;;  %v532_v10 = vld [vmem:[%s885_s11 + $0x8] sm:$0xf] }
  0x2b   : > { %273 = vmatpush.msra.mxu1 %v178_v44  ;;  %395 = vmatpush.msra.mxu3 %v560_v45  ;;  %v221_v4 = vld.sshfl [vmem:[#allocation1] sm:$0xff pattern:$0x75316420]  ;;  %v533_v11 = vld [vmem:[%s885_s11 + $0x10] sm:$0xf] }
  0x2c   : > { %236 = vmatpush.msra.mxu0 %v520_v48  ;;  %335 = vmatpush.msra.mxu2 %v539_v50  ;;  %v173_v6 = vld [vmem:[%s1019_s1] sm:$0xff]  ;;  %252 = vst [vmem:[#allocation1] ss:$2 sm:$0xff] %v169_v62  ;;  %v534_v13 = vld [vmem:[%s885_s11 + $0x18] sm:$0xf] }
  0x2d   : > { %274 = vmatpush.msra.mxu1 %v177_v49  ;;  %396 = vmatpush.msra.mxu3 %v559_v51  ;;  %254 = vst [vmem:[#allocation1 + $0x1] ss:$2 sm:$0xff] %v170_v2  ;;  %v535_v14 = vld [vmem:[%s885_s11 + $0x20] sm:$0xf]  ;;  %v552_v16 = vld [vmem:[%s885_s11 + $0x9] sm:$0xf] }
  0x2e   : > { %237 = vmatpush.msra.mxu0 %v519_v52  ;;  %336 = vmatpush.msra.mxu2 %v538_v54  ;;  %v553_v17 = vld [vmem:[%s885_s11 + $0x11] sm:$0xf]  ;;  %v554_v19 = vld [vmem:[%s885_s11 + $0x19] sm:$0xf]  ;;  %v555_v20 = vld [vmem:[%s885_s11 + $0x21] sm:$0xf] }
  0x2f   : > { %275 = vmatpush.msra.mxu1 %v176_v53  ;;  %397 = vmatpush.msra.mxu3 %v558_v55  ;;  %v222_v9 = vld.sshfl [vmem:[#allocation1 + $0x10] sm:$0xff pattern:$0x75316420]  ;;  %v620_v31 = vld [vmem:[%s1020_s2] ss:$0 sm:$0xff] }
  0x30   : > { %238 = vmatpush.msra.mxu0 %v518_v57  ;;  %337 = vmatpush.msra.mxu2 %v537_v60  ;;  %256 = vst [vmem:[#allocation1 + $0x10] ss:$2 sm:$0xff] %v171_v7 }
  0x31   : > { %276 = vmatpush.msra.mxu1 %v175_v58  ;;  %398 = vmatpush.msra.mxu3 %v557_v61  ;;  %258 = vst [vmem:[#allocation1 + $0x11] ss:$2 sm:$0xff] %v172_v8 }
  0x32   : > { %239 = vmatpush.msra.mxu0 %v517_v63  ;;  %338 = vmatpush.msra.mxu2 %v536_v1 }
  0x33   : > { %277 = vmatpush.msra.mxu1 %v174_v0  ;;  %399 = vmatpush.msra.mxu3 %v556_v3 }
  0x34   : > { %240 = vmatpush.msra.mxu0 %v516_v5  ;;  %v259_v12 = vld.sshfl [vmem:[#allocation1] sm:$0xff pattern:$0x75316420] }
  0x35   : > { %278 = vmatpush.msra.mxu1 %v173_v6  ;;  %241 = vmatmul.f32.vlgmr.msra.gmra.mxu0 %v221_v4  ;;  %312 = vst [vmem:[#allocation1] ss:$2 sm:$0xff] %v532_v10 }
  0x36   : > { %279 = vmatmul.f32.vlgmr.msra.gmra.mxu1 %v259_v12  ;;  %314 = vst [vmem:[#allocation1 + $0x1] ss:$2 sm:$0xff] %v533_v11 }
  0x38   : > { %v260_v15 = vld.sshfl [vmem:[#allocation1 + $0x10] sm:$0xff pattern:$0x75316420] }
  0x39   : > { %316 = vst [vmem:[#allocation1 + $0x10] ss:$2 sm:$0xff] %v534_v13 }
  0x3a   : > { %318 = vst [vmem:[#allocation1 + $0x11] ss:$2 sm:$0xff] %v535_v14 }
  0x3d   : > { %244 = vmatmul.f32.gmra.mxu0 %v222_v9  ;;  %v319_v18 = vld.sshfl [vmem:[#allocation1] sm:$0xff pattern:$0x75316420] }
  0x3e   : > { %282 = vmatmul.f32.gmra.mxu1 %v260_v15  ;;  %339 = vmatmul.f32.vlgmr.msra.gmra.mxu2 %v319_v18  ;;  %373 = vst [vmem:[#allocation1] ss:$2 sm:$0xff] %v552_v16 }
  0x3f   : > { %375 = vst [vmem:[#allocation1 + $0x1] ss:$2 sm:$0xff] %v553_v17 }
  0x41   : > { %v320_v21 = vld.sshfl [vmem:[#allocation1 + $0x10] sm:$0xff pattern:$0x75316420] }
  0x42   : > { %377 = vst [vmem:[#allocation1 + $0x10] ss:$2 sm:$0xff] %v554_v19 }
  0x43   : > { %379 = vst [vmem:[#allocation1 + $0x11] ss:$2 sm:$0xff] %v555_v20 }
  0x46   : > { %v380_v22 = vld.sshfl [vmem:[#allocation1] sm:$0xff pattern:$0x75316420]  ;;  %342 = vmatmul.f32.gmra.mxu2 %v320_v21 }
  0x47   : > { %400 = vmatmul.f32.vlgmr.msra.gmra.mxu3 %v380_v22 }
  0x4a   : > { %v381_v23 = vld.sshfl [vmem:[#allocation1 + $0x10] sm:$0xff pattern:$0x75316420] }
  0x4f   : > { %403 = vmatmul.f32.gmra.mxu3 %v381_v23 }
  0xb2   : > { %v242_v24 = vpop.f32.mrf.mxu0 }
  0xb3   : > { %v280_v25 = vpop.f32.mrf.mxu1 }
  0xb4   : > { %v281_v27 = vadd.f32 %v280_v25, %v242_v24 }
  0xba   : > { %v245_v29 = vpop.f32.mrf.mxu0 }
  0xbb   : > { %v283_v30 = vpop.f32.mrf.mxu1 }
  0xbc   : > { %v284_v34 = vadd.f32 %v283_v30, %v245_v29 }
  0xc1   : > { %v340_v26 = vpop.f32.mrf.mxu2 }
  0xc2   : > { %v346_v28 = vadd.f32 %v340_v26, %v281_v27 }
  0xc9   : > { %v343_v35 = vpop.f32.mrf.mxu2 }
  0xca   : > { %v401_v32 = vpop.f32.mrf.mxu3  ;;  %v347_v38 = vadd.f32 %v343_v35, %v284_v34 }
  0xcb   : > { %v407_v33 = vadd.f32 %v401_v32, %v346_v28 }
  0xcd   : > { %v413_v36 = vadd.f32 %v620_v31, %v407_v33 }
  0xcf   : > { %vm415_vm0 = vcmp.ge.f32.partialorder %v413_v36, 0.0  ;;  %v417_v37 = vmul.f32 0.2, %v413_v36 }
  0xd1   : > { %v419_v39 = vsel %vm415_vm0, %v413_v36, %v417_v37 }
  0xd2   : > { %v423_v40 = vrot.slane %v419_v39, 4  ;;  %428 = vst.msk [vmem:[%s163_s19] sm:$0xf] %vm427_vm1, %v419_v39  ;;  %v404_v41 = vpop.f32.mrf.mxu3 }
  0xd3   : > { %v408_v42 = vadd.f32 %v404_v41, %v347_v38 }
  0xd4   : > { %429 = vst.msk [vmem:[%s163_s19 + $0x4] sm:$0xf] %vm427_vm1, %v423_v40 }
  0xd5   : > { %v414_v43 = vadd.f32 %v620_v31, %v408_v42 }
  0xd7   : > { %vm416_vm2 = vcmp.ge.f32.partialorder %v414_v43, 0.0  ;;  %v418_v44 = vmul.f32 0.2, %v414_v43 }
  0xd9   : > { %v420_v45 = vsel %vm416_vm2, %v414_v43, %v418_v44 }
  0xda   : > { %v424_v46 = vrot.slane %v420_v45, 4  ;;  %430 = vst.msk [vmem:[%s163_s19 + $0x8] sm:$0xf] %vm427_vm1, %v420_v45 }
  0xdc   : > { %431 = vst.msk [vmem:[%s163_s19 + $0xc] sm:$0xf] %vm427_vm1, %v424_v46 }
  0xdd   : > { %648 = shalt.err (!%p645_p3)
}
  0xde   : > { %s685_s6 = smov 64   ;;  %s686_s11 = smov 4  }
  0xdf   : > { %579 = dma.vmem_to_hbm [thread:$0]  (%p745_p5), %s446_s26, 256, %s448_s8, %s433_s16, %s685_s6, %s685_s6, %s686_s11  }
  0xe0 PF: > { %p585_p4 = scmp.ge.s32.totalorder %s683_s15, 2  ;;  %s462_s7 = sand.u32 1, %s671_s12  }
  0xe1   : > { %s463_s10 = scalar_lea.sflag [#allocation3], %s462_s7 }
  0xe2   : > { %p582_p7 = pnand %p585_p4, %p749_p6 }
  0xe4   : > { %p583_p8 = pneg %p582_p7 }
  0xe6   : > { %666 = dma.done.wait (%p583_p8), %s463_s10, 256  }
  0xe7   : > { %668 = vsyncadd (%p583_p8), %s463_s10, 4294967040  ;;  %p13_p9 = scmp.ge.s32.totalorder %s732_s18, 4   ;;  %s1024_s12 = smov %s675_s13 }
  0xe8   : > { %s1025_s13 = smov %s679_s14  ;;  %s1026_s14 = smov %s743_s21 }
  0xe9   : > { %s1027_s15 = smov %s732_s18  ;;  %15 = sbr.rel (!%p13_p9) target bundleno = 3 (0x3), region = 83 }
  0xee   :  { %469 = vsyncpa [#allocation3], 1 }
  0xef   :  { %471 = vsyncpa [#allocation3 + $0x1], 1 }

</bundles_post_ra>
